<compile_context>
chip_gen: v6e
topology: v6e:2x2x1
jax: 0.10.0
libtpu: 0.0.40
codegen_flags: <defaults>
</compile_context>

<pallas_src>
import functools

import jax
import jax.numpy as jnp
from jax.experimental import pallas as pl
from jax.experimental.pallas import tpu as pltpu


def grn_kernel(x_ref, gamma_ref, beta_ref, o_ref, *, inv_c):
    # x_ref:     (B_blk, HW, Cp)  in the I/O dtype
    # gamma_ref: (1, 1, Cp)       f32  (zero-padded beyond true C)
    # beta_ref:  (1, 1, Cp)       f32  (zero-padded beyond true C)
    x = x_ref[...]  # keep in I/O dtype; upcast only inside the reduction

    # Per-(batch, channel) L2 norm over the spatial axis (sublane reduction).
    sumsq = jnp.sum(jnp.square(x.astype(jnp.float32)), axis=1, keepdims=True)
    gx = jnp.sqrt(sumsq)                                   # (B_blk, 1, Cp) f32

    # Mean over channels. Padded channels contribute gx == 0 to the sum, so
    # dividing by the TRUE channel count keeps the mean exact.
    mean = jnp.sum(gx, axis=-1, keepdims=True) * jnp.float32(inv_c)
    nx = gx * pl.reciprocal(mean + jnp.float32(1e-6), approx=False)

    # Fold the affine: y = x * (gamma*Nx + 1) + beta.
    scale = gamma_ref[...] * nx + jnp.float32(1.0)         # (B_blk, 1, Cp) f32
    out = x * scale.astype(x.dtype) + beta_ref[...].astype(x.dtype)
    o_ref[...] = out.astype(o_ref.dtype)


def grn_pallas(x, gamma, beta, *, max_block_bytes=4 * 1024 * 1024):
    """x: (N, H, W, C); gamma/beta: (1, 1, 1, C). Returns same shape/dtype as x."""
    N, H, W, C = x.shape
    HW = H * W
    LANES = 128
    Cp = ((C + LANES - 1) // LANES) * LANES
    pad_c = Cp - C

    # Layout plumbing: flatten spatial, make the channel (lane) axis dense.
    x_flat = x.reshape(N, HW, C)
    if pad_c:
        x_flat = jnp.pad(x_flat, ((0, 0), (0, 0), (0, pad_c)))
    g = jnp.pad(gamma.reshape(1, 1, C).astype(jnp.float32),
                ((0, 0), (0, 0), (0, pad_c)))
    b = jnp.pad(beta.reshape(1, 1, C).astype(jnp.float32),
                ((0, 0), (0, 0), (0, pad_c)))

    # Pack as many batch elements per grid step as fit the per-block budget
    # (amortizes per-step overhead; stays VMEM-safe with double buffering).
    tile_bytes = HW * Cp * x.dtype.itemsize
    b_blk = 1
    for d in range(1, N + 1):
        if N % d == 0 and d * tile_bytes <= max_block_bytes:
            b_blk = d
    grid = (N // b_blk,)

    out_flat = pl.pallas_call(
        functools.partial(grn_kernel, inv_c=1.0 / C),
        out_shape=jax.ShapeDtypeStruct((N, HW, Cp), x.dtype),
        grid=grid,
        in_specs=[
            pl.BlockSpec((b_blk, HW, Cp), lambda n: (n, 0, 0)),
            pl.BlockSpec((1, 1, Cp), lambda n: (0, 0, 0)),
            pl.BlockSpec((1, 1, Cp), lambda n: (0, 0, 0)),
        ],
        out_specs=pl.BlockSpec((b_blk, HW, Cp), lambda n: (n, 0, 0)),
        compiler_params=pltpu.CompilerParams(
            dimension_semantics=("parallel",),
        ),
    )(x_flat, g, b)

    if pad_c:
        out_flat = out_flat[..., :C]
    return out_flat.reshape(N, H, W, C)


def grn_ref(x, gamma, beta):
    """Pure-JAX (f32) reference mirroring the PyTorch forward."""
    x32 = x.astype(jnp.float32)
    gx = jnp.sqrt(jnp.sum(x32 * x32, axis=(1, 2), keepdims=True))   # (N,1,1,C)
    nx = gx / (jnp.mean(gx, axis=-1, keepdims=True) + 1e-6)         # (N,1,1,C)
    return gamma * (x32 * nx) + beta + x32


if __name__ == "__main__":
    key = jax.random.PRNGKey(0)
    kx, kg, kb, kx2, kg2, kb2 = jax.random.split(key, 6)

    # --- main path: lane-dense channels (C = 128, no padding), f32 I/O -----
    N, H, W, C = 2, 8, 8, 128
    x = jax.random.normal(kx, (N, H, W, C), dtype=jnp.float32)
    # PyTorch initializes gamma/beta to zeros; use small non-zero values so
    # the affine path is actually exercised.
    gamma = 0.1 * jax.random.normal(kg, (1, 1, 1, C), dtype=jnp.float32)
    beta = 0.1 * jax.random.normal(kb, (1, 1, 1, C), dtype=jnp.float32)

    out = grn_pallas(x, gamma, beta)
    jax.block_until_ready(out)
    ref = grn_ref(x, gamma, beta)
    assert jnp.allclose(out, ref, atol=1e-5, rtol=1e-5), "f32 C=128 mismatch"

    # --- pad path: ConvNeXt-like C = 96 (padded to 128 inside), f32 I/O ----
    C2 = 96
    x2 = jax.random.normal(kx2, (N, H, W, C2), dtype=jnp.float32)
    gamma2 = 0.1 * jax.random.normal(kg2, (1, 1, 1, C2), dtype=jnp.float32)
    beta2 = 0.1 * jax.random.normal(kb2, (1, 1, 1, C2), dtype=jnp.float32)

    out2 = grn_pallas(x2, gamma2, beta2)
    jax.block_until_ready(out2)
    ref2 = grn_ref(x2, gamma2, beta2)
    assert jnp.allclose(out2, ref2, atol=1e-5, rtol=1e-5), "f32 C=96 mismatch"

    # --- bf16 I/O path (stats in f32, apply + HBM traffic in bf16) ---------
    x_bf = x.astype(jnp.bfloat16)
    out_bf = grn_pallas(x_bf, gamma, beta)
    jax.block_until_ready(out_bf)
    assert out_bf.dtype == jnp.bfloat16
    ref_bf = grn_ref(x_bf, gamma, beta)
    assert jnp.allclose(out_bf.astype(jnp.float32), ref_bf,
                        atol=5e-2, rtol=5e-2), "bf16 mismatch"

    print("KERNEL_OK")
</pallas_src>

<mosaic_0001>
module attributes {stable_mosaic.version = 11 : i64} {
  func.func @grn_kernel(%arg0: i32, %arg1: memref<2x64x128xf32, #tpu.memory_space<vmem>>, %arg2: memref<1x1x128xf32, #tpu.memory_space<vmem>>, %arg3: memref<1x1x128xf32, #tpu.memory_space<vmem>>, %arg4: memref<2x64x128xf32, #tpu.memory_space<vmem>>) attributes {dimension_semantics = [#tpu.dimension_semantics<parallel>], iteration_bounds = array<i64: 1>, scalar_prefetch = 0 : i64, scratch_operands = 0 : i64, tpu.core_type = #tpu.core_type<tc>, window_params = [{transform_indices = @transform_0, window_bounds = array<i64: 2, 64, 128>}, {pipeline_mode = #tpu.pipeline_mode<synchronous>, transform_indices = @transform_1, window_bounds = array<i64: 1, 1, 128>}, {pipeline_mode = #tpu.pipeline_mode<synchronous>, transform_indices = @transform_2, window_bounds = array<i64: 1, 1, 128>}, {transform_indices = @transform_3, window_bounds = array<i64: 2, 64, 128>}]} {
    %c0 = arith.constant 0 : index
    %c0_0 = arith.constant 0 : index
    %c0_1 = arith.constant 0 : index
    %0 = vector.load %arg1[%c0, %c0_0, %c0_1] : memref<2x64x128xf32, #tpu.memory_space<vmem>>, vector<2x64x128xf32>
    %1 = arith.mulf %0, %0 : vector<2x64x128xf32>
    %cst = arith.constant dense<0.000000e+00> : vector<2x128xf32>
    %2 = vector.multi_reduction <add>, %1, %cst [1] : vector<2x64x128xf32> to vector<2x128xf32>
    %3 = vector.shape_cast %2 : vector<2x128xf32> to vector<2x1x128xf32>
    %4 = math.sqrt %3 : vector<2x1x128xf32>
    %cst_2 = arith.constant dense<0.000000e+00> : vector<2x1xf32>
    %5 = vector.multi_reduction <add>, %4, %cst_2 [2] : vector<2x1x128xf32> to vector<2x1xf32>
    %6 = vector.shape_cast %5 : vector<2x1xf32> to vector<2x1x1xf32>
    %cst_3 = arith.constant 7.812500e-03 : f32
    %7 = vector.broadcast %cst_3 : f32 to vector<2x1x1xf32>
    %8 = arith.mulf %6, %7 : vector<2x1x1xf32>
    %cst_4 = arith.constant 9.99999997E-7 : f32
    %9 = vector.broadcast %cst_4 : f32 to vector<2x1x1xf32>
    %10 = arith.addf %8, %9 : vector<2x1x1xf32>
    %11 = tpu.reciprocal %10 : vector<2x1x1xf32> -> vector<2x1x1xf32>
    %12 = vector.broadcast %11 : vector<2x1x1xf32> to vector<2x1x128xf32>
    %13 = arith.mulf %4, %12 : vector<2x1x128xf32>
    %c0_5 = arith.constant 0 : index
    %c0_6 = arith.constant 0 : index
    %c0_7 = arith.constant 0 : index
    %14 = vector.load %arg2[%c0_5, %c0_6, %c0_7] : memref<1x1x128xf32, #tpu.memory_space<vmem>>, vector<1x1x128xf32>
    %15 = vector.broadcast %14 : vector<1x1x128xf32> to vector<2x1x128xf32>
    %16 = arith.mulf %15, %13 : vector<2x1x128xf32>
    %cst_8 = arith.constant 1.000000e+00 : f32
    %17 = vector.broadcast %cst_8 : f32 to vector<2x1x128xf32>
    %18 = arith.addf %16, %17 : vector<2x1x128xf32>
    %19 = vector.broadcast %18 : vector<2x1x128xf32> to vector<2x64x128xf32>
    %20 = arith.mulf %0, %19 : vector<2x64x128xf32>
    %c0_9 = arith.constant 0 : index
    %c0_10 = arith.constant 0 : index
    %c0_11 = arith.constant 0 : index
    %21 = vector.load %arg3[%c0_9, %c0_10, %c0_11] : memref<1x1x128xf32, #tpu.memory_space<vmem>>, vector<1x1x128xf32>
    %22 = vector.broadcast %21 : vector<1x1x128xf32> to vector<2x64x128xf32>
    %23 = arith.addf %20, %22 : vector<2x64x128xf32>
    %c0_12 = arith.constant 0 : index
    %c0_13 = arith.constant 0 : index
    %c0_14 = arith.constant 0 : index
    %24 = vector.load %arg4[%c0_12, %c0_13, %c0_14] : memref<2x64x128xf32, #tpu.memory_space<vmem>>, vector<2x64x128xf32>
    tpu.vector_store %arg4[%c0_12, %c0_13, %c0_14], %23 {strides = array<i32>} : memref<2x64x128xf32, #tpu.memory_space<vmem>>, vector<2x64x128xf32>,
    return
  }
  func.func @transform_0(%arg0: i32) -> (i32, i32, i32) {
    %c0_i32 = arith.constant 0 : i32
    %c0_i32_0 = arith.constant 0 : i32
    %c0_i32_1 = arith.constant 0 : i32
    return %arg0, %c0_i32, %c0_i32_0 : i32, i32, i32
  }
  func.func @transform_1(%arg0: i32) -> (i32, i32, i32) {
    %c0_i32 = arith.constant 0 : i32
    %c0_i32_0 = arith.constant 0 : i32
    %c0_i32_1 = arith.constant 0 : i32
    %c0_i32_2 = arith.constant 0 : i32
    return %c0_i32, %c0_i32_0, %c0_i32_1 : i32, i32, i32
  }
  func.func @transform_2(%arg0: i32) -> (i32, i32, i32) {
    %c0_i32 = arith.constant 0 : i32
    %c0_i32_0 = arith.constant 0 : i32
    %c0_i32_1 = arith.constant 0 : i32
    %c0_i32_2 = arith.constant 0 : i32
    return %c0_i32, %c0_i32_0, %c0_i32_1 : i32, i32, i32
  }
  func.func @transform_3(%arg0: i32) -> (i32, i32, i32) {
    %c0_i32 = arith.constant 0 : i32
    %c0_i32_0 = arith.constant 0 : i32
    %c0_i32_1 = arith.constant 0 : i32
    return %arg0, %c0_i32, %c0_i32_0 : i32, i32, i32
  }
}

</mosaic_0001>

<bundles_post_ra>
// kernel: tpu_custom_call.1
= control target key start
LH: loop header
LB: loop body
LE: loop exit
PB: predicated region body
PF: predicated region fallthrough
CT: control target
= control target key end

     0   :  { %8 = vsyncpa [#allocation3], 0  ;;  %s381_s0 = inlined_call_operand.hbm [shape: f32[2,64,128], index: 0, kind: input, shape index: {}]   ;;  %s382_s1 = inlined_call_operand.vmem [shape: f32[1,1,128], index: 1, kind: input, shape index: {}]   ;;  %s383_s2 = inlined_call_operand.vmem [shape: f32[1,1,128], index: 2, kind: input, shape index: {}]   ;;  %s384_s3 = inlined_call_operand.hbm [shape: f32[2,64,128], index: 3, kind: output, shape index: {}]  }
   0x1   :  { %9 = vsyncpa [#allocation4], 0  ;;  %s259_s12 = smov [#allocation2]  }
   0x2   :  { %s15_s13 = sshll.u32 %s259_s12, 4  ;;  %s16_s13 = int_to_ptr.vmem [resolvable:$true] %s15_s13 }
   0x3   :  { %s223_s14 = scalar_lea.vmem %s16_s13, 2048  ;;  %p228_p1 = scmp.lt.s32.totalorder %s16_s13, %s16_s13 }
   0x4   :  { %p224_p0 = scmp.ne.s32.totalorder %s16_s13, %s223_s14  ;;  %p229_p2 = scmp.lt.s32.totalorder %s223_s14, %s223_s14 }
   0x6   :  { %p230_p3 = por %p229_p2, %p228_p1 }
   0x8   :  { %p231_p4 = pnand %p230_p3, %p224_p0 }
   0xa   :  { %234 = shalt.err (!%p231_p4)
}
   0xb   :  { %s260_s15 = smov 128   ;;  %s261_s16 = smov 8  }
   0xc   :  { %21 = dma.hbm_to_vmem [thread:$0]  %s381_s0, 2048, %s16_s13, [#allocation3], %s260_s15, %s260_s15, %s261_s16  }
   0xd   :  { %255 = dma.done.wait [#allocation3], 2048  }
   0xe   :  { %256 = vsyncadd [#allocation3], 4294965248  ;;  %v289_v0 = vld [vmem:[#allocation2] sm:$0xff]  ;;  %v291_v1 = vld [vmem:[#allocation2 + $0x8] sm:$0xff] }
   0xf   :  { %v293_v2 = vld [vmem:[#allocation2 + $0x10] sm:$0xff]  ;;  %v295_v3 = vld [vmem:[#allocation2 + $0x18] sm:$0xff]  ;;  %v45_v4 = vmul.f32 %v289_v0, %v289_v0  ;;  %v46_v5 = vmul.f32 %v291_v1, %v291_v1  ;;  %v303_v7 = vld [vmem:[#allocation2 + $0x20] sm:$0xff] }
  0x10   :  { %v47_v6 = vmul.f32 %v293_v2, %v293_v2  ;;  %v305_v8 = vld [vmem:[#allocation2 + $0x40] sm:$0xff]  ;;  %v48_v9 = vmul.f32 %v295_v3, %v295_v3  ;;  %v309_v11 = vld [vmem:[#allocation2 + $0x48] sm:$0xff]  ;;  %v311_v12 = vld [vmem:[#allocation2 + $0x50] sm:$0xff]  ;;  %v49_v18 = vmul.f32 %v303_v7, %v303_v7 }
  0x11   :  { %v61_v10 = vadd.f32 %v46_v5, %v45_v4  ;;  %v313_v13 = vld [vmem:[#allocation2 + $0x58] sm:$0xff]  ;;  %v53_v14 = vmul.f32 %v305_v8, %v305_v8  ;;  %v317_v15 = vld [vmem:[#allocation2 + $0x28] sm:$0xff]  ;;  %v54_v16 = vmul.f32 %v309_v11, %v309_v11  ;;  %v55_v17 = vmul.f32 %v311_v12, %v311_v12  ;;  %v325_v20 = vld [vmem:[#allocation2 + $0x60] sm:$0xff] }
  0x12   :  { %v327_v21 = vld [vmem:[#allocation2 + $0x30] sm:$0xff]  ;;  %v56_v22 = vmul.f32 %v313_v13, %v313_v13  ;;  %v50_v24 = vmul.f32 %v317_v15, %v317_v15  ;;  %v333_v26 = vld [vmem:[#allocation2 + $0x68] sm:$0xff]  ;;  %v335_v27 = vld [vmem:[#allocation2 + $0x38] sm:$0xff]  ;;  %v57_v28 = vmul.f32 %v325_v20, %v325_v20 }
  0x13   :  { %v62_v19 = vadd.f32 %v61_v10, %v47_v6  ;;  %v74_v23 = vadd.f32 %v54_v16, %v53_v14  ;;  %v51_v30 = vmul.f32 %v327_v21, %v327_v21  ;;  %v341_v32 = vld [vmem:[#allocation2 + $0x70] sm:$0xff]  ;;  %v58_v33 = vmul.f32 %v333_v26, %v333_v26  ;;  %v347_v37 = vld [vmem:[#allocation2 + $0x78] sm:$0xff] }
  0x14   :  { %v52_v35 = vmul.f32 %v335_v27, %v335_v27  ;;  %v59_v38 = vmul.f32 %v341_v32, %v341_v32  ;;  %v60_v41 = vmul.f32 %v347_v37, %v347_v37 }
  0x15   :  { %v63_v25 = vadd.f32 %v62_v19, %v48_v9  ;;  %v75_v29 = vadd.f32 %v74_v23, %v55_v17 }
  0x17   :  { %v64_v31 = vadd.f32 %v63_v25, %v49_v18  ;;  %v76_v34 = vadd.f32 %v75_v29, %v56_v22  ;;  %v120_v22 = vlaneseq  ;;  %v113_v25 = vld [vmem:[%s382_s1] sm:$0x1]  ;;  %s262_s1 = smov [#allocation5]  }
  0x19   :  { %v65_v36 = vadd.f32 %v64_v31, %v50_v24  ;;  %v77_v39 = vadd.f32 %v76_v34, %v57_v28  ;;  %v121_v23 = vshrl.u32 %v120_v22, 7 }
  0x1b   :  { %v66_v40 = vadd.f32 %v65_v36, %v51_v30  ;;  %v78_v42 = vadd.f32 %v77_v39, %v58_v33  ;;  %v122_v29 = vsub.s32 0, %v121_v23  ;;  %v202_v36 = vld [vmem:[%s383_s2] ss:$0 sm:$0xff]  ;;  %s190_s2 = sshll.u32 %s262_s1, 4  ;;  %s191_s2 = int_to_ptr.vmem [resolvable:$true] %s190_s2 }
  0x1c   :  { %s235_s22 = scalar_lea.vmem %s191_s2, 2048  ;;  %p240_p6 = scmp.lt.s32.totalorder %s191_s2, %s191_s2 }
  0x1d   :  { %v67_v43 = vadd.f32 %v66_v40, %v52_v35  ;;  %v79_v44 = vadd.f32 %v78_v42, %v59_v38  ;;  %p236_p5 = scmp.ne.s32.totalorder %s191_s2, %s235_s22  ;;  %p241_p7 = scmp.lt.s32.totalorder %s235_s22, %s235_s22 }
  0x1f   :  { %v68_v45 = vrot.slane %v67_v43, 4  ;;  %v80_v46 = vadd.f32 %v79_v44, %v60_v41  ;;  %p242_p8 = por %p241_p7, %p240_p6 }
  0x21   :  { %v69_v47 = vadd.f32 %v68_v45, %v67_v43  ;;  %v81_v48 = vrot.slane %v80_v46, 4  ;;  %p243_p9 = pnand %p242_p8, %p236_p5 }
  0x23   :  { %v70_v49 = vrot.slane %v69_v47, 2  ;;  %v82_v50 = vadd.f32 %v81_v48, %v80_v46 }
  0x25   :  { %v71_v51 = vadd.f32 %v70_v49, %v69_v47  ;;  %v83_v52 = vrot.slane %v82_v50, 2 }
  0x27   :  { %v72_v53 = vrot.slane %v71_v51, 1  ;;  %v84_v54 = vadd.f32 %v83_v52, %v82_v50 }
  0x29   :  { %v73_v55 = vadd.f32 %v72_v53, %v71_v51  ;;  %v85_v56 = vrot.slane %v84_v54, 1 }
  0x2b   :  { %207 = vrsqrt.f32 %v73_v55  ;;  %v86_v57 = vadd.f32 %v85_v56, %v84_v54  ;;  %vm89_vm0 = vcmp.eq.f32.partialorder %v73_v55, inf  ;;  %v92_v59 = vand.u32 2147483648, %v73_v55 }
  0x2c   :  { %vm91_vm1 = vcmp.eq.f32.partialorder %v73_v55, 0.0 }
  0x2d   :  { %209 = vrsqrt.f32 %v86_v57  ;;  %vm96_vm2 = vcmp.eq.f32.partialorder %v86_v57, inf  ;;  %v99_v63 = vand.u32 2147483648, %v86_v57  ;;  %vm98_vm3 = vcmp.eq.f32.partialorder %v86_v57, 0.0 }
  0x38   :  { %v208_v58 = vpop.eup %207 }
  0x39   :  { %v88_v60 = vmul.f32 %v208_v58, %v73_v55 }
  0x3a   :  { %v210_v61 = vpop.eup %209 }
  0x3b   :  { %v90_v62 = vsel %vm89_vm0, %v73_v55, %v88_v60  ;;  %v95_v5 = vmul.f32 %v210_v61, %v86_v57 }
  0x3c   :  { %v93_v4 = vsel %vm91_vm1, %v92_v59, %v90_v62 }
  0x3d   :  { %101 = vadd.xlane.f32.xlu0 %v93_v4  ;;  %v97_v6 = vsel %vm96_vm2, %v86_v57, %v95_v5 }
  0x3e   :  { %v100_v9 = vsel %vm98_vm3, %v99_v63, %v97_v6 }
  0x41   :  { %103 = vadd.xlane.f32.xlu0 %v100_v9 }
  0xc6   :  { %v102_v10 = vpop.xlane.xlu0 %101 }
  0xc7   :  { %v105_v14 = vmul.f32 0.0078125, %v102_v10 }
  0xc9   :  { %v107_v16 = vadd.f32 1e-06, %v105_v14 }
  0xca   :  { %v104_v17 = vpop.xlane.xlu0 %103 }
  0xcb   :  { %211 = vrcp.f32 %v107_v16  ;;  %v106_v18 = vmul.f32 0.0078125, %v104_v17 }
  0xcd   :  { %v108_v19 = vadd.f32 1e-06, %v106_v18 }
  0xcf   :  { %213 = vrcp.f32 %v108_v19 }
  0xd8   :  { %v212_v24 = vpop.eup %211 }
  0xd9   :  { %v111_v28 = vmul.f32 %v212_v24, %v93_v4 }
  0xdb   :  { %v114_v30 = vmul.f32 %v113_v25, %v111_v28 }
  0xdc   :  { %v214_v31 = vpop.eup %213 }
  0xdd   :  { %v116_v33 = vadd.f32 1.0, %v114_v30  ;;  %v112_v34 = vmul.f32 %v214_v31, %v100_v9 }
  0xdf   :  { %v123_v35 = vrot.slane %v116_v33, %v122_v29  ;;  %v115_v38 = vmul.f32 %v113_v25, %v112_v34 }
  0xe1   :  { %v130_v39 = vmul.f32 %v123_v35, %v289_v0  ;;  %v131_v40 = vmul.f32 %v123_v35, %v291_v1  ;;  %v132_v41 = vmul.f32 %v123_v35, %v293_v2  ;;  %v133_v42 = vmul.f32 %v123_v35, %v295_v3 }
  0xe2   :  { %v134_v43 = vmul.f32 %v123_v35, %v303_v7  ;;  %v135_v44 = vmul.f32 %v123_v35, %v317_v15  ;;  %v136_v45 = vmul.f32 %v123_v35, %v327_v21  ;;  %v137_v46 = vmul.f32 %v123_v35, %v335_v27 }
  0xe3   :  { %v153_v47 = vadd.f32 %v202_v36, %v130_v39  ;;  %v154_v48 = vadd.f32 %v202_v36, %v131_v40  ;;  %v155_v49 = vadd.f32 %v202_v36, %v132_v41  ;;  %v156_v50 = vadd.f32 %v202_v36, %v133_v42 }
  0xe4   :  { %v157_v51 = vadd.f32 %v202_v36, %v134_v43  ;;  %v158_v0 = vadd.f32 %v202_v36, %v135_v44  ;;  %v159_v52 = vadd.f32 %v202_v36, %v136_v45  ;;  %v160_v1 = vadd.f32 %v202_v36, %v137_v46 }
  0xe5   :  { %169 = vst [vmem:[#allocation5] sm:$0xff] %v153_v47  ;;  %170 = vst [vmem:[#allocation5 + $0x8] sm:$0xff] %v154_v48  ;;  %v117_v2 = vadd.f32 1.0, %v115_v38 }
  0xe6   :  { %171 = vst [vmem:[#allocation5 + $0x10] sm:$0xff] %v155_v49  ;;  %172 = vst [vmem:[#allocation5 + $0x18] sm:$0xff] %v156_v50 }
  0xe7   :  { %173 = vst [vmem:[#allocation5 + $0x20] sm:$0xff] %v157_v51  ;;  %174 = vst [vmem:[#allocation5 + $0x28] sm:$0xff] %v158_v0  ;;  %v127_v3 = vrot.slane %v117_v2, %v122_v29 }
  0xe8   :  { %175 = vst [vmem:[#allocation5 + $0x30] sm:$0xff] %v159_v52  ;;  %176 = vst [vmem:[#allocation5 + $0x38] sm:$0xff] %v160_v1 }
  0xe9   :  { %v138_v7 = vmul.f32 %v127_v3, %v305_v8  ;;  %v139_v15 = vmul.f32 %v127_v3, %v309_v11  ;;  %v140_v21 = vmul.f32 %v127_v3, %v311_v12  ;;  %v141_v27 = vmul.f32 %v127_v3, %v313_v13 }
  0xea   :  { %v142_v53 = vmul.f32 %v127_v3, %v325_v20  ;;  %v143_v54 = vmul.f32 %v127_v3, %v333_v26  ;;  %v144_v55 = vmul.f32 %v127_v3, %v341_v32  ;;  %v145_v56 = vmul.f32 %v127_v3, %v347_v37 }
  0xeb   :  { %v161_v57 = vadd.f32 %v202_v36, %v138_v7  ;;  %v162_v58 = vadd.f32 %v202_v36, %v139_v15  ;;  %v163_v59 = vadd.f32 %v202_v36, %v140_v21  ;;  %v164_v8 = vadd.f32 %v202_v36, %v141_v27 }
  0xec   :  { %v165_v60 = vadd.f32 %v202_v36, %v142_v53  ;;  %v166_v11 = vadd.f32 %v202_v36, %v143_v54  ;;  %v167_v61 = vadd.f32 %v202_v36, %v144_v55  ;;  %v168_v12 = vadd.f32 %v202_v36, %v145_v56 }
  0xed   :  { %177 = vst [vmem:[#allocation5 + $0x40] sm:$0xff] %v161_v57  ;;  %178 = vst [vmem:[#allocation5 + $0x48] sm:$0xff] %v162_v58 }
  0xee   :  { %179 = vst [vmem:[#allocation5 + $0x50] sm:$0xff] %v163_v59  ;;  %180 = vst [vmem:[#allocation5 + $0x58] sm:$0xff] %v164_v8 }
  0xef   :  { %181 = vst [vmem:[#allocation5 + $0x60] sm:$0xff] %v165_v60  ;;  %182 = vst [vmem:[#allocation5 + $0x68] sm:$0xff] %v166_v11 }
  0xf0   :  { %183 = vst [vmem:[#allocation5 + $0x70] sm:$0xff] %v167_v61  ;;  %184 = vst [vmem:[#allocation5 + $0x78] sm:$0xff] %v168_v12 }
  0xf1   :  { %246 = shalt.err (!%p243_p9)
}
  0xf2   :  { %196 = dma.vmem_to_hbm [thread:$0]  %s191_s2, 2048, %s384_s3, [#allocation4], %s260_s15, %s260_s15, %s261_s16  }
  0xf3   :  { %257 = dma.done.wait [#allocation4], 2048  }
  0xf4   :  { %258 = vsyncadd [#allocation4], 4294965248 }
  0xf5   :  { %200 = vsyncpa [#allocation3], 1 }
  0xf6   :  { %201 = vsyncpa [#allocation4], 1 }

</bundles_post_ra>
